<compile_context>
chip_gen: v7x
topology: tpu7x:2x2x1
jax: 0.10.0
libtpu: 0.0.40
codegen_flags: <defaults>
</compile_context>

<pallas_src>
import functools

import numpy as np

import jax
import jax.numpy as jnp
from jax import lax
from jax.experimental import pallas as pl
from jax.experimental.pallas import tpu as pltpu


def _response_kernel(w_ref, feat_ref, mask_ref, out_ref, *,
                     n_boxes, s, bd, hw, w_img, pad):
    # w_ref   : (n_boxes*s*s, bd, 1)  per-(box, tap) weight columns
    # feat_ref: (bd, hw)              whole problem, lane/sublane dense
    # mask_ref: (s*s, bd, hw)         0/1 halo-validity masks per tap offset
    # out_ref : (bd, hw)              max-over-boxes response map
    ss = s * s
    f = feat_ref[...].astype(jnp.float32)          # (8, 256): two full vregs

    # Build the s*s shifted-and-masked taps once; reused by every box.
    # Shifts ride the XLU via pltpu.roll (off the VALU slot); halo zeroing is
    # a 0/1 mask multiply (no padded copy of the feature anywhere).
    taps = []
    for dy in range(s):
        for dx in range(s):
            off = (dy - pad) * w_img + (dx - pad)
            t = dy * s + dx
            if dy == pad and dx == pad:
                taps.append(f)                                    # center tap: all valid
            else:
                shifted = pltpu.roll(f, shift=(-off) % hw, axis=1)
                taps.append(shifted * mask_ref[t])

    # Fully unrolled box fold (n_boxes is static): one vector MAC per
    # (box, tap) over the whole slab; weight column (bd, 1) broadcasts
    # across the 256 lanes.
    resp = None
    for j in range(n_boxes):
        acc = None
        for t in range(ss):
            w_col = w_ref[j * ss + t].astype(jnp.float32)         # (bd, 1)
            term = taps[t] * w_col
            acc = term if acc is None else acc + term
        resp = acc if resp is None else jnp.maximum(resp, acc)

    # Single lane/sublane-dense store for the whole problem.
    out_ref[...] = resp.astype(out_ref.dtype)


def prototype2response_map(prototype, feature, *, d, s, n_boxes):
    """prototype: (batch, n_boxes*s*s*d), feature: (batch, d, h, w) NCHW.

    Returns the NCHW response map (batch, d, h, w), matching the PyTorch module.
    """
    assert s % 2 == 1, "output-shape assert in the PyTorch module implies odd s"
    assert n_boxes >= 1
    batch, dd, h, w = feature.shape
    assert dd == d
    pad = (s - 1) // 2
    hw = h * w
    bd = batch * d
    ss = s * s

    # Free reshape only (contiguous NCHW -> merge dims): no transpose, no pad.
    feat_flat = feature.reshape(bd, hw)

    # Tiny (864 B) weight re-layout so each (box, tap) weight is a (bd, 1)
    # sublane column: w_tbl[j*ss + dy*s + dx, b*d + c, 0] = proto[b, j, dy, dx, c].
    w_tbl = (prototype.reshape(batch, n_boxes, s, s, d)
             .transpose(1, 2, 3, 0, 4)
             .reshape(n_boxes * ss, bd, 1))

    # Static 0/1 halo-validity masks per (dy, dx) tap offset, pre-broadcast
    # across the batch*d sublanes (built once with numpy at trace time).
    yy, xx = np.meshgrid(np.arange(h), np.arange(w), indexing="ij")
    masks_np = np.zeros((ss, hw), dtype=np.float32)
    for dy in range(s):
        for dx in range(s):
            valid = ((yy + dy - pad >= 0) & (yy + dy - pad < h) &
                     (xx + dx - pad >= 0) & (xx + dx - pad < w))
            masks_np[dy * s + dx] = valid.reshape(hw).astype(np.float32)
    masks = jnp.asarray(np.ascontiguousarray(
        np.broadcast_to(masks_np[:, None, :], (ss, bd, hw))))

    kernel = functools.partial(_response_kernel, n_boxes=n_boxes, s=s, bd=bd,
                               hw=hw, w_img=w, pad=pad)

    itemsize = jnp.dtype(feature.dtype).itemsize
    cost = pl.CostEstimate(
        flops=2 * batch * n_boxes * d * h * w * ss,
        transcendentals=0,
        bytes_accessed=(feat_flat.size * itemsize                 # feature in
                        + w_tbl.size * jnp.dtype(w_tbl.dtype).itemsize  # weights in
                        + masks.size * 4                          # masks in
                        + feat_flat.size * itemsize))             # output

    out_flat = pl.pallas_call(
        kernel,
        out_shape=jax.ShapeDtypeStruct((bd, hw), feature.dtype),
        grid_spec=pltpu.PrefetchScalarGridSpec(
            num_scalar_prefetch=0,
            grid=(1,),
            in_specs=[
                # Whole weight table (last two dims == full array dims).
                pl.BlockSpec((n_boxes * ss, bd, 1), lambda i: (0, 0, 0)),
                # Whole feature slab: (8, 256), lane/sublane dense.
                pl.BlockSpec((bd, hw), lambda i: (0, 0)),
                # Batch/channel-invariant halo masks, pre-broadcast.
                pl.BlockSpec((ss, bd, hw), lambda i: (0, 0, 0)),
            ],
            out_specs=pl.BlockSpec((bd, hw), lambda i: (0, 0)),
        ),
        compiler_params=pltpu.CompilerParams(
            dimension_semantics=("arbitrary",)),
        cost_estimate=cost,
    )(w_tbl, feat_flat, masks)

    return out_flat.reshape(batch, d, h, w)


def _reference(prototype, feature, *, d, s, n_boxes):
    """Pure-JAX reference mirroring the PyTorch forward (depthwise conv + max)."""
    batch, _, h, w = feature.shape
    pad = (s - 1) // 2
    proto = prototype.reshape(batch, n_boxes, s, s, d).transpose(0, 1, 4, 2, 3)
    sims = []
    for b in range(batch):
        per_box = []
        for j in range(n_boxes):
            out = lax.conv_general_dilated(
                feature[b][None],            # (1, d, h, w)
                proto[b, j][:, None],        # (d, 1, s, s)
                window_strides=(1, 1),
                padding=[(pad, pad), (pad, pad)],
                dimension_numbers=("NCHW", "OIHW", "NCHW"),
                feature_group_count=d,
            )
            per_box.append(out[0])
        sims.append(jnp.stack(per_box))      # (n_boxes, d, h, w)
    sims = jnp.stack(sims)                   # (b, n_boxes, d, h, w)
    return sims.max(axis=1)


if __name__ == "__main__":
    # Small shapes consistent with the module: batch=2, d=4, h=w=16, s=3, n_boxes=3.
    batch, d, h, w = 2, 4, 16, 16
    s, n_boxes = 3, 3

    key = jax.random.PRNGKey(0)
    k_feat, k_proto = jax.random.split(key)
    feature = jax.random.normal(k_feat, (batch, d, h, w), dtype=jnp.float32)
    prototype = jax.random.normal(k_proto, (batch, n_boxes * s * s * d),
                                  dtype=jnp.float32)

    out = prototype2response_map(prototype, feature, d=d, s=s, n_boxes=n_boxes)
    out = jax.block_until_ready(out)

    ref = _reference(prototype, feature, d=d, s=s, n_boxes=n_boxes)
    assert out.shape == (batch, d, h, w), out.shape
    assert jnp.allclose(out, ref, atol=1e-5, rtol=1e-5), "mismatch vs reference"

    print("KERNEL_OK")
</pallas_src>

<mosaic_0001>
module attributes {stable_mosaic.version = 11 : i64} {
  func.func @_response_kernel(%arg0: i32, %arg1: memref<27x8x1xf32, #tpu.memory_space<vmem>>, %arg2: memref<8x256xf32, #tpu.memory_space<vmem>>, %arg3: memref<9x8x256xf32, #tpu.memory_space<vmem>>, %arg4: memref<8x256xf32, #tpu.memory_space<vmem>>) attributes {dimension_semantics = [#tpu.dimension_semantics<arbitrary>], iteration_bounds = array<i64: 1>, scalar_prefetch = 0 : i64, scratch_operands = 0 : i64, tpu.core_type = #tpu.core_type<tc>, window_params = [{pipeline_mode = #tpu.pipeline_mode<synchronous>, transform_indices = @transform_0, window_bounds = array<i64: 27, 8, 1>}, {pipeline_mode = #tpu.pipeline_mode<synchronous>, transform_indices = @transform_1, window_bounds = array<i64: 8, 256>}, {pipeline_mode = #tpu.pipeline_mode<synchronous>, transform_indices = @transform_2, window_bounds = array<i64: 9, 8, 256>}, {pipeline_mode = #tpu.pipeline_mode<synchronous>, transform_indices = @transform_3, window_bounds = array<i64: 8, 256>}]} {
    %c0 = arith.constant 0 : index
    %c0_0 = arith.constant 0 : index
    %0 = vector.load %arg2[%c0, %c0_0] : memref<8x256xf32, #tpu.memory_space<vmem>>, vector<8x256xf32>
    %c17_i32 = arith.constant 17 : i32
    %1 = tpu.dynamic_rotate %0 by %c17_i32 dim 1 : vector<8x256xf32>, i32 -> vector<8x256xf32>
    %c0_1 = arith.constant 0 : index
    %c0_2 = arith.constant 0 : index
    %c0_3 = arith.constant 0 : index
    %2 = vector.load %arg3[%c0_1, %c0_2, %c0_3] : memref<9x8x256xf32, #tpu.memory_space<vmem>>, vector<1x8x256xf32>
    %3 = vector.shape_cast %2 : vector<1x8x256xf32> to vector<8x256xf32>
    %4 = arith.mulf %1, %3 : vector<8x256xf32>
    %c16_i32 = arith.constant 16 : i32
    %5 = tpu.dynamic_rotate %0 by %c16_i32 dim 1 : vector<8x256xf32>, i32 -> vector<8x256xf32>
    %c1 = arith.constant 1 : index
    %c0_4 = arith.constant 0 : index
    %c0_5 = arith.constant 0 : index
    %6 = vector.load %arg3[%c1, %c0_4, %c0_5] : memref<9x8x256xf32, #tpu.memory_space<vmem>>, vector<1x8x256xf32>
    %7 = vector.shape_cast %6 : vector<1x8x256xf32> to vector<8x256xf32>
    %8 = arith.mulf %5, %7 : vector<8x256xf32>
    %c15_i32 = arith.constant 15 : i32
    %9 = tpu.dynamic_rotate %0 by %c15_i32 dim 1 : vector<8x256xf32>, i32 -> vector<8x256xf32>
    %c2 = arith.constant 2 : index
    %c0_6 = arith.constant 0 : index
    %c0_7 = arith.constant 0 : index
    %10 = vector.load %arg3[%c2, %c0_6, %c0_7] : memref<9x8x256xf32, #tpu.memory_space<vmem>>, vector<1x8x256xf32>
    %11 = vector.shape_cast %10 : vector<1x8x256xf32> to vector<8x256xf32>
    %12 = arith.mulf %9, %11 : vector<8x256xf32>
    %c1_i32 = arith.constant 1 : i32
    %13 = tpu.dynamic_rotate %0 by %c1_i32 dim 1 : vector<8x256xf32>, i32 -> vector<8x256xf32>
    %c3 = arith.constant 3 : index
    %c0_8 = arith.constant 0 : index
    %c0_9 = arith.constant 0 : index
    %14 = vector.load %arg3[%c3, %c0_8, %c0_9] : memref<9x8x256xf32, #tpu.memory_space<vmem>>, vector<1x8x256xf32>
    %15 = vector.shape_cast %14 : vector<1x8x256xf32> to vector<8x256xf32>
    %16 = arith.mulf %13, %15 : vector<8x256xf32>
    %c255_i32 = arith.constant 255 : i32
    %17 = tpu.dynamic_rotate %0 by %c255_i32 dim 1 : vector<8x256xf32>, i32 -> vector<8x256xf32>
    %c5 = arith.constant 5 : index
    %c0_10 = arith.constant 0 : index
    %c0_11 = arith.constant 0 : index
    %18 = vector.load %arg3[%c5, %c0_10, %c0_11] : memref<9x8x256xf32, #tpu.memory_space<vmem>>, vector<1x8x256xf32>
    %19 = vector.shape_cast %18 : vector<1x8x256xf32> to vector<8x256xf32>
    %20 = arith.mulf %17, %19 : vector<8x256xf32>
    %c241_i32 = arith.constant 241 : i32
    %21 = tpu.dynamic_rotate %0 by %c241_i32 dim 1 : vector<8x256xf32>, i32 -> vector<8x256xf32>
    %c6 = arith.constant 6 : index
    %c0_12 = arith.constant 0 : index
    %c0_13 = arith.constant 0 : index
    %22 = vector.load %arg3[%c6, %c0_12, %c0_13] : memref<9x8x256xf32, #tpu.memory_space<vmem>>, vector<1x8x256xf32>
    %23 = vector.shape_cast %22 : vector<1x8x256xf32> to vector<8x256xf32>
    %24 = arith.mulf %21, %23 : vector<8x256xf32>
    %c240_i32 = arith.constant 240 : i32
    %25 = tpu.dynamic_rotate %0 by %c240_i32 dim 1 : vector<8x256xf32>, i32 -> vector<8x256xf32>
    %c7 = arith.constant 7 : index
    %c0_14 = arith.constant 0 : index
    %c0_15 = arith.constant 0 : index
    %26 = vector.load %arg3[%c7, %c0_14, %c0_15] : memref<9x8x256xf32, #tpu.memory_space<vmem>>, vector<1x8x256xf32>
    %27 = vector.shape_cast %26 : vector<1x8x256xf32> to vector<8x256xf32>
    %28 = arith.mulf %25, %27 : vector<8x256xf32>
    %c239_i32 = arith.constant 239 : i32
    %29 = tpu.dynamic_rotate %0 by %c239_i32 dim 1 : vector<8x256xf32>, i32 -> vector<8x256xf32>
    %c8 = arith.constant 8 : index
    %c0_16 = arith.constant 0 : index
    %c0_17 = arith.constant 0 : index
    %30 = vector.load %arg3[%c8, %c0_16, %c0_17] : memref<9x8x256xf32, #tpu.memory_space<vmem>>, vector<1x8x256xf32>
    %31 = vector.shape_cast %30 : vector<1x8x256xf32> to vector<8x256xf32>
    %32 = arith.mulf %29, %31 : vector<8x256xf32>
    %c0_18 = arith.constant 0 : index
    %c0_19 = arith.constant 0 : index
    %c0_20 = arith.constant 0 : index
    %33 = vector.load %arg1[%c0_18, %c0_19, %c0_20] : memref<27x8x1xf32, #tpu.memory_space<vmem>>, vector<1x8x1xf32>
    %34 = vector.shape_cast %33 : vector<1x8x1xf32> to vector<8x1xf32>
    %35 = vector.broadcast %34 : vector<8x1xf32> to vector<8x256xf32>
    %36 = arith.mulf %4, %35 : vector<8x256xf32>
    %c1_21 = arith.constant 1 : index
    %c0_22 = arith.constant 0 : index
    %c0_23 = arith.constant 0 : index
    %37 = vector.load %arg1[%c1_21, %c0_22, %c0_23] : memref<27x8x1xf32, #tpu.memory_space<vmem>>, vector<1x8x1xf32>
    %38 = vector.shape_cast %37 : vector<1x8x1xf32> to vector<8x1xf32>
    %39 = vector.broadcast %38 : vector<8x1xf32> to vector<8x256xf32>
    %40 = arith.mulf %8, %39 : vector<8x256xf32>
    %41 = arith.addf %36, %40 : vector<8x256xf32>
    %c2_24 = arith.constant 2 : index
    %c0_25 = arith.constant 0 : index
    %c0_26 = arith.constant 0 : index
    %42 = vector.load %arg1[%c2_24, %c0_25, %c0_26] : memref<27x8x1xf32, #tpu.memory_space<vmem>>, vector<1x8x1xf32>
    %43 = vector.shape_cast %42 : vector<1x8x1xf32> to vector<8x1xf32>
    %44 = vector.broadcast %43 : vector<8x1xf32> to vector<8x256xf32>
    %45 = arith.mulf %12, %44 : vector<8x256xf32>
    %46 = arith.addf %41, %45 : vector<8x256xf32>
    %c3_27 = arith.constant 3 : index
    %c0_28 = arith.constant 0 : index
    %c0_29 = arith.constant 0 : index
    %47 = vector.load %arg1[%c3_27, %c0_28, %c0_29] : memref<27x8x1xf32, #tpu.memory_space<vmem>>, vector<1x8x1xf32>
    %48 = vector.shape_cast %47 : vector<1x8x1xf32> to vector<8x1xf32>
    %49 = vector.broadcast %48 : vector<8x1xf32> to vector<8x256xf32>
    %50 = arith.mulf %16, %49 : vector<8x256xf32>
    %51 = arith.addf %46, %50 : vector<8x256xf32>
    %c4 = arith.constant 4 : index
    %c0_30 = arith.constant 0 : index
    %c0_31 = arith.constant 0 : index
    %52 = vector.load %arg1[%c4, %c0_30, %c0_31] : memref<27x8x1xf32, #tpu.memory_space<vmem>>, vector<1x8x1xf32>
    %53 = vector.shape_cast %52 : vector<1x8x1xf32> to vector<8x1xf32>
    %54 = vector.broadcast %53 : vector<8x1xf32> to vector<8x256xf32>
    %55 = arith.mulf %0, %54 : vector<8x256xf32>
    %56 = arith.addf %51, %55 : vector<8x256xf32>
    %c5_32 = arith.constant 5 : index
    %c0_33 = arith.constant 0 : index
    %c0_34 = arith.constant 0 : index
    %57 = vector.load %arg1[%c5_32, %c0_33, %c0_34] : memref<27x8x1xf32, #tpu.memory_space<vmem>>, vector<1x8x1xf32>
    %58 = vector.shape_cast %57 : vector<1x8x1xf32> to vector<8x1xf32>
    %59 = vector.broadcast %58 : vector<8x1xf32> to vector<8x256xf32>
    %60 = arith.mulf %20, %59 : vector<8x256xf32>
    %61 = arith.addf %56, %60 : vector<8x256xf32>
    %c6_35 = arith.constant 6 : index
    %c0_36 = arith.constant 0 : index
    %c0_37 = arith.constant 0 : index
    %62 = vector.load %arg1[%c6_35, %c0_36, %c0_37] : memref<27x8x1xf32, #tpu.memory_space<vmem>>, vector<1x8x1xf32>
    %63 = vector.shape_cast %62 : vector<1x8x1xf32> to vector<8x1xf32>
    %64 = vector.broadcast %63 : vector<8x1xf32> to vector<8x256xf32>
    %65 = arith.mulf %24, %64 : vector<8x256xf32>
    %66 = arith.addf %61, %65 : vector<8x256xf32>
    %c7_38 = arith.constant 7 : index
    %c0_39 = arith.constant 0 : index
    %c0_40 = arith.constant 0 : index
    %67 = vector.load %arg1[%c7_38, %c0_39, %c0_40] : memref<27x8x1xf32, #tpu.memory_space<vmem>>, vector<1x8x1xf32>
    %68 = vector.shape_cast %67 : vector<1x8x1xf32> to vector<8x1xf32>
    %69 = vector.broadcast %68 : vector<8x1xf32> to vector<8x256xf32>
    %70 = arith.mulf %28, %69 : vector<8x256xf32>
    %71 = arith.addf %66, %70 : vector<8x256xf32>
    %c8_41 = arith.constant 8 : index
    %c0_42 = arith.constant 0 : index
    %c0_43 = arith.constant 0 : index
    %72 = vector.load %arg1[%c8_41, %c0_42, %c0_43] : memref<27x8x1xf32, #tpu.memory_space<vmem>>, vector<1x8x1xf32>
    %73 = vector.shape_cast %72 : vector<1x8x1xf32> to vector<8x1xf32>
    %74 = vector.broadcast %73 : vector<8x1xf32> to vector<8x256xf32>
    %75 = arith.mulf %32, %74 : vector<8x256xf32>
    %76 = arith.addf %71, %75 : vector<8x256xf32>
    %c9 = arith.constant 9 : index
    %c0_44 = arith.constant 0 : index
    %c0_45 = arith.constant 0 : index
    %77 = vector.load %arg1[%c9, %c0_44, %c0_45] : memref<27x8x1xf32, #tpu.memory_space<vmem>>, vector<1x8x1xf32>
    %78 = vector.shape_cast %77 : vector<1x8x1xf32> to vector<8x1xf32>
    %79 = vector.broadcast %78 : vector<8x1xf32> to vector<8x256xf32>
    %80 = arith.mulf %4, %79 : vector<8x256xf32>
    %c10 = arith.constant 10 : index
    %c0_46 = arith.constant 0 : index
    %c0_47 = arith.constant 0 : index
    %81 = vector.load %arg1[%c10, %c0_46, %c0_47] : memref<27x8x1xf32, #tpu.memory_space<vmem>>, vector<1x8x1xf32>
    %82 = vector.shape_cast %81 : vector<1x8x1xf32> to vector<8x1xf32>
    %83 = vector.broadcast %82 : vector<8x1xf32> to vector<8x256xf32>
    %84 = arith.mulf %8, %83 : vector<8x256xf32>
    %85 = arith.addf %80, %84 : vector<8x256xf32>
    %c11 = arith.constant 11 : index
    %c0_48 = arith.constant 0 : index
    %c0_49 = arith.constant 0 : index
    %86 = vector.load %arg1[%c11, %c0_48, %c0_49] : memref<27x8x1xf32, #tpu.memory_space<vmem>>, vector<1x8x1xf32>
    %87 = vector.shape_cast %86 : vector<1x8x1xf32> to vector<8x1xf32>
    %88 = vector.broadcast %87 : vector<8x1xf32> to vector<8x256xf32>
    %89 = arith.mulf %12, %88 : vector<8x256xf32>
    %90 = arith.addf %85, %89 : vector<8x256xf32>
    %c12 = arith.constant 12 : index
    %c0_50 = arith.constant 0 : index
    %c0_51 = arith.constant 0 : index
    %91 = vector.load %arg1[%c12, %c0_50, %c0_51] : memref<27x8x1xf32, #tpu.memory_space<vmem>>, vector<1x8x1xf32>
    %92 = vector.shape_cast %91 : vector<1x8x1xf32> to vector<8x1xf32>
    %93 = vector.broadcast %92 : vector<8x1xf32> to vector<8x256xf32>
    %94 = arith.mulf %16, %93 : vector<8x256xf32>
    %95 = arith.addf %90, %94 : vector<8x256xf32>
    %c13 = arith.constant 13 : index
    %c0_52 = arith.constant 0 : index
    %c0_53 = arith.constant 0 : index
    %96 = vector.load %arg1[%c13, %c0_52, %c0_53] : memref<27x8x1xf32, #tpu.memory_space<vmem>>, vector<1x8x1xf32>
    %97 = vector.shape_cast %96 : vector<1x8x1xf32> to vector<8x1xf32>
    %98 = vector.broadcast %97 : vector<8x1xf32> to vector<8x256xf32>
    %99 = arith.mulf %0, %98 : vector<8x256xf32>
    %100 = arith.addf %95, %99 : vector<8x256xf32>
    %c14 = arith.constant 14 : index
    %c0_54 = arith.constant 0 : index
    %c0_55 = arith.constant 0 : index
    %101 = vector.load %arg1[%c14, %c0_54, %c0_55] : memref<27x8x1xf32, #tpu.memory_space<vmem>>, vector<1x8x1xf32>
    %102 = vector.shape_cast %101 : vector<1x8x1xf32> to vector<8x1xf32>
    %103 = vector.broadcast %102 : vector<8x1xf32> to vector<8x256xf32>
    %104 = arith.mulf %20, %103 : vector<8x256xf32>
    %105 = arith.addf %100, %104 : vector<8x256xf32>
    %c15 = arith.constant 15 : index
    %c0_56 = arith.constant 0 : index
    %c0_57 = arith.constant 0 : index
    %106 = vector.load %arg1[%c15, %c0_56, %c0_57] : memref<27x8x1xf32, #tpu.memory_space<vmem>>, vector<1x8x1xf32>
    %107 = vector.shape_cast %106 : vector<1x8x1xf32> to vector<8x1xf32>
    %108 = vector.broadcast %107 : vector<8x1xf32> to vector<8x256xf32>
    %109 = arith.mulf %24, %108 : vector<8x256xf32>
    %110 = arith.addf %105, %109 : vector<8x256xf32>
    %c16 = arith.constant 16 : index
    %c0_58 = arith.constant 0 : index
    %c0_59 = arith.constant 0 : index
    %111 = vector.load %arg1[%c16, %c0_58, %c0_59] : memref<27x8x1xf32, #tpu.memory_space<vmem>>, vector<1x8x1xf32>
    %112 = vector.shape_cast %111 : vector<1x8x1xf32> to vector<8x1xf32>
    %113 = vector.broadcast %112 : vector<8x1xf32> to vector<8x256xf32>
    %114 = arith.mulf %28, %113 : vector<8x256xf32>
    %115 = arith.addf %110, %114 : vector<8x256xf32>
    %c17 = arith.constant 17 : index
    %c0_60 = arith.constant 0 : index
    %c0_61 = arith.constant 0 : index
    %116 = vector.load %arg1[%c17, %c0_60, %c0_61] : memref<27x8x1xf32, #tpu.memory_space<vmem>>, vector<1x8x1xf32>
    %117 = vector.shape_cast %116 : vector<1x8x1xf32> to vector<8x1xf32>
    %118 = vector.broadcast %117 : vector<8x1xf32> to vector<8x256xf32>
    %119 = arith.mulf %32, %118 : vector<8x256xf32>
    %120 = arith.addf %115, %119 : vector<8x256xf32>
    %121 = arith.maximumf %76, %120 : vector<8x256xf32>
    %c18 = arith.constant 18 : index
    %c0_62 = arith.constant 0 : index
    %c0_63 = arith.constant 0 : index
    %122 = vector.load %arg1[%c18, %c0_62, %c0_63] : memref<27x8x1xf32, #tpu.memory_space<vmem>>, vector<1x8x1xf32>
    %123 = vector.shape_cast %122 : vector<1x8x1xf32> to vector<8x1xf32>
    %124 = vector.broadcast %123 : vector<8x1xf32> to vector<8x256xf32>
    %125 = arith.mulf %4, %124 : vector<8x256xf32>
    %c19 = arith.constant 19 : index
    %c0_64 = arith.constant 0 : index
    %c0_65 = arith.constant 0 : index
    %126 = vector.load %arg1[%c19, %c0_64, %c0_65] : memref<27x8x1xf32, #tpu.memory_space<vmem>>, vector<1x8x1xf32>
    %127 = vector.shape_cast %126 : vector<1x8x1xf32> to vector<8x1xf32>
    %128 = vector.broadcast %127 : vector<8x1xf32> to vector<8x256xf32>
    %129 = arith.mulf %8, %128 : vector<8x256xf32>
    %130 = arith.addf %125, %129 : vector<8x256xf32>
    %c20 = arith.constant 20 : index
    %c0_66 = arith.constant 0 : index
    %c0_67 = arith.constant 0 : index
    %131 = vector.load %arg1[%c20, %c0_66, %c0_67] : memref<27x8x1xf32, #tpu.memory_space<vmem>>, vector<1x8x1xf32>
    %132 = vector.shape_cast %131 : vector<1x8x1xf32> to vector<8x1xf32>
    %133 = vector.broadcast %132 : vector<8x1xf32> to vector<8x256xf32>
    %134 = arith.mulf %12, %133 : vector<8x256xf32>
    %135 = arith.addf %130, %134 : vector<8x256xf32>
    %c21 = arith.constant 21 : index
    %c0_68 = arith.constant 0 : index
    %c0_69 = arith.constant 0 : index
    %136 = vector.load %arg1[%c21, %c0_68, %c0_69] : memref<27x8x1xf32, #tpu.memory_space<vmem>>, vector<1x8x1xf32>
    %137 = vector.shape_cast %136 : vector<1x8x1xf32> to vector<8x1xf32>
    %138 = vector.broadcast %137 : vector<8x1xf32> to vector<8x256xf32>
    %139 = arith.mulf %16, %138 : vector<8x256xf32>
    %140 = arith.addf %135, %139 : vector<8x256xf32>
    %c22 = arith.constant 22 : index
    %c0_70 = arith.constant 0 : index
    %c0_71 = arith.constant 0 : index
    %141 = vector.load %arg1[%c22, %c0_70, %c0_71] : memref<27x8x1xf32, #tpu.memory_space<vmem>>, vector<1x8x1xf32>
    %142 = vector.shape_cast %141 : vector<1x8x1xf32> to vector<8x1xf32>
    %143 = vector.broadcast %142 : vector<8x1xf32> to vector<8x256xf32>
    %144 = arith.mulf %0, %143 : vector<8x256xf32>
    %145 = arith.addf %140, %144 : vector<8x256xf32>
    %c23 = arith.constant 23 : index
    %c0_72 = arith.constant 0 : index
    %c0_73 = arith.constant 0 : index
    %146 = vector.load %arg1[%c23, %c0_72, %c0_73] : memref<27x8x1xf32, #tpu.memory_space<vmem>>, vector<1x8x1xf32>
    %147 = vector.shape_cast %146 : vector<1x8x1xf32> to vector<8x1xf32>
    %148 = vector.broadcast %147 : vector<8x1xf32> to vector<8x256xf32>
    %149 = arith.mulf %20, %148 : vector<8x256xf32>
    %150 = arith.addf %145, %149 : vector<8x256xf32>
    %c24 = arith.constant 24 : index
    %c0_74 = arith.constant 0 : index
    %c0_75 = arith.constant 0 : index
    %151 = vector.load %arg1[%c24, %c0_74, %c0_75] : memref<27x8x1xf32, #tpu.memory_space<vmem>>, vector<1x8x1xf32>
    %152 = vector.shape_cast %151 : vector<1x8x1xf32> to vector<8x1xf32>
    %153 = vector.broadcast %152 : vector<8x1xf32> to vector<8x256xf32>
    %154 = arith.mulf %24, %153 : vector<8x256xf32>
    %155 = arith.addf %150, %154 : vector<8x256xf32>
    %c25 = arith.constant 25 : index
    %c0_76 = arith.constant 0 : index
    %c0_77 = arith.constant 0 : index
    %156 = vector.load %arg1[%c25, %c0_76, %c0_77] : memref<27x8x1xf32, #tpu.memory_space<vmem>>, vector<1x8x1xf32>
    %157 = vector.shape_cast %156 : vector<1x8x1xf32> to vector<8x1xf32>
    %158 = vector.broadcast %157 : vector<8x1xf32> to vector<8x256xf32>
    %159 = arith.mulf %28, %158 : vector<8x256xf32>
    %160 = arith.addf %155, %159 : vector<8x256xf32>
    %c26 = arith.constant 26 : index
    %c0_78 = arith.constant 0 : index
    %c0_79 = arith.constant 0 : index
    %161 = vector.load %arg1[%c26, %c0_78, %c0_79] : memref<27x8x1xf32, #tpu.memory_space<vmem>>, vector<1x8x1xf32>
    %162 = vector.shape_cast %161 : vector<1x8x1xf32> to vector<8x1xf32>
    %163 = vector.broadcast %162 : vector<8x1xf32> to vector<8x256xf32>
    %164 = arith.mulf %32, %163 : vector<8x256xf32>
    %165 = arith.addf %160, %164 : vector<8x256xf32>
    %166 = arith.maximumf %121, %165 : vector<8x256xf32>
    %c0_80 = arith.constant 0 : index
    %c0_81 = arith.constant 0 : index
    %167 = vector.load %arg4[%c0_80, %c0_81] : memref<8x256xf32, #tpu.memory_space<vmem>>, vector<8x256xf32>
    tpu.vector_store %arg4[%c0_80, %c0_81], %166 {strides = array<i32>} : memref<8x256xf32, #tpu.memory_space<vmem>>, vector<8x256xf32>,
    return
  }
  func.func @transform_0(%arg0: i32) -> (i32, i32, i32) {
    %c0_i32 = arith.constant 0 : i32
    %c0_i32_0 = arith.constant 0 : i32
    %c0_i32_1 = arith.constant 0 : i32
    %c0_i32_2 = arith.constant 0 : i32
    return %c0_i32, %c0_i32_0, %c0_i32_1 : i32, i32, i32
  }
  func.func @transform_1(%arg0: i32) -> (i32, i32) {
    %c0_i32 = arith.constant 0 : i32
    %c0_i32_0 = arith.constant 0 : i32
    %c0_i32_1 = arith.constant 0 : i32
    return %c0_i32, %c0_i32_0 : i32, i32
  }
  func.func @transform_2(%arg0: i32) -> (i32, i32, i32) {
    %c0_i32 = arith.constant 0 : i32
    %c0_i32_0 = arith.constant 0 : i32
    %c0_i32_1 = arith.constant 0 : i32
    %c0_i32_2 = arith.constant 0 : i32
    return %c0_i32, %c0_i32_0, %c0_i32_1 : i32, i32, i32
  }
  func.func @transform_3(%arg0: i32) -> (i32, i32) {
    %c0_i32 = arith.constant 0 : i32
    %c0_i32_0 = arith.constant 0 : i32
    %c0_i32_1 = arith.constant 0 : i32
    return %c0_i32, %c0_i32_0 : i32, i32
  }
}

</mosaic_0001>

<bundles_post_ra>
// kernel: tpu_custom_call.1
= control target key start
LH: loop header
LB: loop body
LE: loop exit
PB: predicated region body
PF: predicated region fallthrough
CT: control target
= control target key end

     0   :  { %s500_s14 = smov 16   ;;  %s501_s15 = smov 17   ;;  %v502_v2 = vmov 0   ;;  %s867_s0 = inlined_call_operand.vmem [shape: f32[27,8,1], index: 0, kind: input, shape index: {}]   ;;  %s868_s1 = inlined_call_operand.vmem [shape: f32[8,256], index: 1, kind: input, shape index: {}]   ;;  %s869_s2 = inlined_call_operand.vmem [shape: f32[9,8,256], index: 2, kind: input, shape index: {}]   ;;  %s870_s3 = inlined_call_operand.hbm [shape: f32[8,256], index: 3, kind: output, shape index: {}]  }
   0x1   :  { %v533_v0 = vld [vmem:[%s868_s1] sm:$0xff]  ;;  %v540_v1 = vld [vmem:[%s868_s1 + $0x8] sm:$0xff]  ;;  %475 = vset.pattern.permute.xlu1 %v502_v2  ;;  %474 = vset.pattern.permute.xlu0 %v502_v2  ;;  %s503_s18 = smov 15   ;;  %s504_s19 = smov 1  }
   0x2   :  { %30 = vrot.lane.b32.xlu1 %v533_v0, %s500_s14  ;;  %17 = vrot.lane.b32.xlu0 %v533_v0, %s501_s15 }
   0x6   :  { %32 = vrot.lane.b32.xlu1 %v540_v1, %s500_s14  ;;  %19 = vrot.lane.b32.xlu0 %v540_v1, %s501_s15 }
   0xa   :  { %44 = vrot.lane.b32.xlu1 %v540_v1, %s503_s18  ;;  %42 = vrot.lane.b32.xlu0 %v533_v0, %s503_s18 }
   0xe   :  { %56 = vrot.lane.b32.xlu1 %v540_v1, %s504_s19  ;;  %54 = vrot.lane.b32.xlu0 %v533_v0, %s504_s19 }
   0xf   :  { %8 = vsyncpa [#allocation3], 0  ;;  %s505_s1 = smov 127   ;;  %s506_s20 = smov 113   ;;  %v438_v3 = vld [vmem:[%s867_s0 + $0x8] sm:$0xff]  ;;  %v114_v4 = vld [vmem:[%s867_s0] sm:$0xff]  ;;  %v21_v50 = vlaneseq }
  0x10   :  { %s507_s21 = smov 112   ;;  %s508_s22 = smov 111   ;;  %v439_v5 = vld [vmem:[%s867_s0 + $0x10] sm:$0xff]  ;;  %v440_v6 = vld [vmem:[%s867_s0 + $0x18] sm:$0xff]  ;;  %v441_v7 = vld [vmem:[%s867_s0 + $0x20] sm:$0xff] }
  0x11   :  { %v446_v8 = vld [vmem:[%s867_s0 + $0x48] sm:$0xff]  ;;  %v447_v9 = vld [vmem:[%s867_s0 + $0x50] sm:$0xff]  ;;  %v448_v10 = vld [vmem:[%s867_s0 + $0x58] sm:$0xff]  ;;  %v659_v53 = vand.u32 127, %v21_v50 }
  0x12   :  { %68 = vrot.lane.b32.xlu1 %v540_v1, %s505_s1  ;;  %66 = vrot.lane.b32.xlu0 %v533_v0, %s505_s1  ;;  %v455_v11 = vld [vmem:[%s867_s0 + $0x90] sm:$0xff]  ;;  %v456_v12 = vld [vmem:[%s867_s0 + $0x98] sm:$0xff] }
  0x13   :  { %v449_v13 = vld [vmem:[%s867_s0 + $0x60] sm:$0xff]  ;;  %v450_v15 = vld [vmem:[%s867_s0 + $0x68] sm:$0xff]  ;;  %v451_v18 = vld [vmem:[%s867_s0 + $0x70] sm:$0xff]  ;;  %vm34_vm0 = vcmp.lt.s32.totalorder %v659_v53, 16  ;;  %vm23_vm1 = vcmp.lt.s32.totalorder %v659_v53, 17  ;;  %vm46_vm2 = vcmp.lt.s32.totalorder %v659_v53, 15 }
  0x14   :  { %v457_v14 = vld [vmem:[%s867_s0 + $0xa0] sm:$0xff]  ;;  %v458_v16 = vld [vmem:[%s867_s0 + $0xa8] sm:$0xff]  ;;  %v459_v19 = vld [vmem:[%s867_s0 + $0xb0] sm:$0xff]  ;;  %vm58_vm3 = vcmp.lt.s32.totalorder %v659_v53, 1  ;;  %vm70_vm4 = vcmp.lt.s32.totalorder %v659_v53, 127  ;;  %vm82_vm5 = vcmp.lt.s32.totalorder %v659_v53, 113 }
  0x15   :  { %v442_v17 = vld [vmem:[%s867_s0 + $0x28] sm:$0xff]  ;;  %v443_v20 = vld [vmem:[%s867_s0 + $0x30] sm:$0xff]  ;;  %v452_v21 = vld [vmem:[%s867_s0 + $0x78] sm:$0xff]  ;;  %vm94_vm6 = vcmp.lt.s32.totalorder %v659_v53, 112  ;;  %vm106_vm7 = vcmp.lt.s32.totalorder %v659_v53, 111 }
  0x16   :  { %80 = vrot.lane.b32.xlu1 %v540_v1, %s506_s20  ;;  %78 = vrot.lane.b32.xlu0 %v533_v0, %s506_s20  ;;  %v460_v22 = vld [vmem:[%s867_s0 + $0xb8] sm:$0xff]  ;;  %v453_v24 = vld [vmem:[%s867_s0 + $0x80] sm:$0xff] }
  0x17   :  { %v444_v23 = vld [vmem:[%s867_s0 + $0x38] sm:$0xff]  ;;  %v461_v25 = vld [vmem:[%s867_s0 + $0xc0] sm:$0xff]  ;;  %v454_v27 = vld [vmem:[%s867_s0 + $0x88] sm:$0xff] }
  0x18   :  { %v445_v26 = vld [vmem:[%s867_s0 + $0x40] sm:$0xff]  ;;  %v462_v28 = vld [vmem:[%s867_s0 + $0xc8] sm:$0xff]  ;;  %v463_v29 = vld [vmem:[%s867_s0 + $0xd0] sm:$0xff] }
  0x19   :  { %v424_v56 = vld [vmem:[%s869_s2 + $0x10] sm:$0xff]  ;;  %v425_v57 = vld [vmem:[%s869_s2 + $0x18] sm:$0xff]  ;;  %v26_v60 = vld [vmem:[%s869_s2] sm:$0xff] }
  0x1a   :  { %92 = vrot.lane.b32.xlu1 %v540_v1, %s507_s21  ;;  %90 = vrot.lane.b32.xlu0 %v533_v0, %s507_s21  ;;  %v27_v61 = vld [vmem:[%s869_s2 + $0x8] sm:$0xff] }
  0x1e   :  { %104 = vrot.lane.b32.xlu1 %v540_v1, %s508_s22  ;;  %102 = vrot.lane.b32.xlu0 %v533_v0, %s508_s22 }
  0x22   :  { %126 = vperm.xlu1 %475, %v438_v3   ;;  %117 = vperm.xlu0 %474, %v114_v4   ;;  %v426_v4 = vld [vmem:[%s869_s2 + $0x20] sm:$0xff] }
  0x26   :  { %137 = vperm.xlu1 %475, %v439_v5   ;;  %148 = vperm.xlu0 %474, %v440_v6   ;;  %v427_v5 = vld [vmem:[%s869_s2 + $0x28] sm:$0xff] }
  0x2a   :  { %159 = vperm.xlu1 %475, %v441_v7   ;;  %214 = vperm.xlu0 %474, %v446_v8  }
  0x2e   :  { %223 = vperm.xlu1 %475, %v447_v9   ;;  %234 = vperm.xlu0 %474, %v448_v10  }
  0x32   :  { %313 = vperm.xlu1 %475, %v455_v11   ;;  %322 = vperm.xlu0 %474, %v456_v12  }
  0x36   :  { %245 = vperm.xlu1 %475, %v449_v13   ;;  %333 = vperm.xlu0 %474, %v457_v14  }
  0x3a   :  { %256 = vperm.xlu1 %475, %v450_v15   ;;  %344 = vperm.xlu0 %474, %v458_v16  }
  0x3e   :  { %170 = vperm.xlu1 %475, %v442_v17   ;;  %267 = vperm.xlu0 %474, %v451_v18  }
  0x42   :  { %355 = vperm.xlu1 %475, %v459_v19   ;;  %181 = vperm.xlu0 %474, %v443_v20   ;;  %v428_v20 = vld [vmem:[%s869_s2 + $0x30] sm:$0xff] }
  0x46   :  { %278 = vperm.xlu1 %475, %v452_v21   ;;  %366 = vperm.xlu0 %474, %v460_v22   ;;  %v429_v21 = vld [vmem:[%s869_s2 + $0x38] sm:$0xff] }
  0x4a   :  { %192 = vperm.xlu1 %475, %v444_v23   ;;  %289 = vperm.xlu0 %474, %v453_v24  }
  0x4e   :  { %377 = vperm.xlu1 %475, %v461_v25   ;;  %203 = vperm.xlu0 %474, %v445_v26  }
  0x52   :  { %300 = vperm.xlu1 %475, %v454_v27   ;;  %388 = vperm.xlu0 %474, %v462_v28   ;;  %v430_v28 = vld [vmem:[%s869_s2 + $0x50] sm:$0xff] }
  0x56   :  { %399 = vperm.xlu1 %475, %v463_v29   ;;  %v431_v29 = vld [vmem:[%s869_s2 + $0x58] sm:$0xff] }
  0x74   :  { %v31_v30 = vpop.permute.xlu1 %30  ;;  %v18_v31 = vpop.permute.xlu0 %17 }
  0x78   :  { %v33_v32 = vpop.permute.xlu1 %32  ;;  %v20_v33 = vpop.permute.xlu0 %19 }
  0x79   :  { %v35_v58 = vsel %vm34_vm0, %v31_v30, %v33_v32  ;;  %v36_v59 = vsel %vm34_vm0, %v33_v32, %v31_v30  ;;  %v24_v62 = vsel %vm23_vm1, %v18_v31, %v20_v33  ;;  %v25_v63 = vsel %vm23_vm1, %v20_v33, %v18_v31 }
  0x7a   :  { %v690_v8 = vmul.f32 %v424_v56, %v36_v59  ;;  %v692_v9 = vmul.f32 %v425_v57, %v35_v58  ;;  %v694_v10 = vmul.f32 %v26_v60, %v25_v63  ;;  %v696_v11 = vmul.f32 %v27_v61, %v24_v62 }
  0x7c   :  { %v45_v34 = vpop.permute.xlu1 %44  ;;  %v43_v35 = vpop.permute.xlu0 %42 }
  0x7d   :  { %v47_v6 = vsel %vm46_vm2, %v43_v35, %v45_v34  ;;  %v48_v7 = vsel %vm46_vm2, %v45_v34, %v43_v35 }
  0x7e   :  { %v698_v12 = vmul.f32 %v426_v4, %v48_v7  ;;  %v700_v13 = vmul.f32 %v427_v5, %v47_v6 }
  0x80   :  { %v57_v36 = vpop.permute.xlu1 %56  ;;  %v55_v37 = vpop.permute.xlu0 %54 }
  0x81   :  { %v59_v22 = vsel %vm58_vm3, %v55_v37, %v57_v36  ;;  %v60_v23 = vsel %vm58_vm3, %v57_v36, %v55_v37  ;;  %v432_v36 = vld [vmem:[%s869_s2 + $0x60] sm:$0xff]  ;;  %v433_v37 = vld [vmem:[%s869_s2 + $0x68] sm:$0xff] }
  0x82   :  { %v64_v34 = vmul.f32 %v428_v20, %v60_v23  ;;  %v65_v35 = vmul.f32 %v429_v21, %v59_v22 }
  0x84   :  { %v637_v38 = vpop.permute.xlu1 %68  ;;  %v639_v39 = vpop.permute.xlu0 %66 }
  0x85   :  { %v71_v30 = vsel %vm70_vm4, %v639_v39, %v637_v38  ;;  %v72_v31 = vsel %vm70_vm4, %v637_v38, %v639_v39  ;;  %v434_v39 = vld [vmem:[%s869_s2 + $0x70] sm:$0xff] }
  0x86   :  { %v765_v57 = vmul.f32 %v431_v29, %v72_v31 }
  0x88   :  { %v641_v40 = vpop.permute.xlu1 %80  ;;  %v643_v41 = vpop.permute.xlu0 %78 }
  0x89   :  { %v84_v38 = vsel %vm82_vm5, %v641_v40, %v643_v41 }
  0x8a   :  { %v773_v63 = vmul.f32 %v433_v37, %v84_v38 }
  0x8c   :  { %v645_v42 = vpop.permute.xlu1 %92  ;;  %v647_v43 = vpop.permute.xlu0 %90 }
  0x8d   :  { %v96_v50 = vsel %vm94_vm6, %v645_v42, %v647_v43 }
  0x90   :  { %v649_v44 = vpop.permute.xlu1 %104  ;;  %v651_v45 = vpop.permute.xlu0 %102 }
  0x91   :  { %v107_v7 = vsel %vm106_vm7, %v651_v45, %v649_v44 }
  0xa1   :  { %v127_v46 = vpop.permute.xlu1 %126  ;;  %v118_v47 = vpop.permute.xlu0 %117 }
  0xa2   :  { %v129_v16 = vmul.f32 %v127_v46, %v690_v8  ;;  %v130_v17 = vmul.f32 %v127_v46, %v692_v9  ;;  %v120_v18 = vmul.f32 %v118_v47, %v694_v10  ;;  %v121_v19 = vmul.f32 %v118_v47, %v696_v11  ;;  %v435_v47 = vld [vmem:[%s869_s2 + $0x78] sm:$0xff] }
  0xa3   :  { %v83_v46 = vsel %vm82_vm5, %v643_v41, %v641_v40  ;;  %v763_v41 = vmul.f32 %v430_v28, %v71_v30  ;;  %v779_v5 = vmul.f32 %v435_v47, %v96_v50 }
  0xa4   :  { %v131_v32 = vadd.f32 %v129_v16, %v120_v18  ;;  %v132_v33 = vadd.f32 %v130_v17, %v121_v19  ;;  %v771_v62 = vmul.f32 %v432_v36, %v83_v46  ;;  %v436_v18 = vld [vmem:[%s869_s2 + $0x80] sm:$0xff] }
  0xa5   :  { %v138_v48 = vpop.permute.xlu1 %137  ;;  %v653_v49 = vpop.permute.xlu0 %148 }
  0xa6   :  { %v140_v24 = vmul.f32 %v138_v48, %v698_v12  ;;  %v141_v25 = vmul.f32 %v138_v48, %v700_v13  ;;  %v95_v48 = vsel %vm94_vm6, %v647_v43, %v645_v42  ;;  %v151_v42 = vmul.f32 %v653_v49, %v64_v34 }
  0xa7   :  { %v152_v43 = vmul.f32 %v653_v49, %v65_v35  ;;  %v777_v4 = vmul.f32 %v434_v39, %v95_v48  ;;  %v108_v49 = vsel %vm106_vm7, %v649_v44, %v651_v45 }
  0xa8   :  { %v142_v56 = vadd.f32 %v140_v24, %v131_v32  ;;  %v143_v40 = vadd.f32 %v141_v25, %v132_v33 }
  0xa9   :  { %v655_v51 = vpop.permute.xlu1 %159  ;;  %v657_v52 = vpop.permute.xlu0 %214 }
  0xaa   :  { %v217_v6 = vmul.f32 %v657_v52, %v694_v10  ;;  %v153_v16 = vadd.f32 %v151_v42, %v142_v56  ;;  %v154_v17 = vadd.f32 %v152_v43, %v143_v40  ;;  %v162_v19 = vmul.f32 %v655_v51, %v533_v0 }
  0xab   :  { %v163_v20 = vmul.f32 %v655_v51, %v540_v1 }
  0xac   :  { %v164_v36 = vadd.f32 %v162_v19, %v153_v16 }
  0xad   :  { %v661_v54 = vpop.permute.xlu1 %223  ;;  %v663_v55 = vpop.permute.xlu0 %234 }
  0xae   :  { %v226_v58 = vmul.f32 %v661_v54, %v690_v8  ;;  %v227_v59 = vmul.f32 %v661_v54, %v692_v9  ;;  %v218_v54 = vmul.f32 %v657_v52, %v696_v11  ;;  %v437_v52 = vld [vmem:[%s869_s2 + $0x88] sm:$0xff]  ;;  %v237_v28 = vmul.f32 %v663_v55, %v698_v12  ;;  %s509_s2 = smov [#allocation2]  }
  0xaf   :  { %v238_v51 = vmul.f32 %v663_v55, %v700_v13  ;;  %v819_v31 = vmul.f32 %v437_v52, %v108_v49  ;;  %s416_s23 = sshll.u32 %s509_s2, 4  ;;  %s417_s23 = int_to_ptr.vmem [resolvable:$true] %s416_s23 }
  0xb0   :  { %v228_v21 = vadd.f32 %v226_v58, %v217_v6  ;;  %v229_v22 = vadd.f32 %v227_v59, %v218_v54  ;;  %s476_s24 = scalar_lea.vmem %s417_s23, 256  ;;  %p481_p1 = scmp.lt.s32.totalorder %s417_s23, %s417_s23 }
  0xb1   :  { %v680_v2 = vpop.permute.xlu1 %313  ;;  %v682_v3 = vpop.permute.xlu0 %322  ;;  %p477_p0 = scmp.ne.s32.totalorder %s417_s23, %s476_s24  ;;  %p482_p2 = scmp.lt.s32.totalorder %s476_s24, %s476_s24 }
  0xb2   :  { %v316_v45 = vmul.f32 %v680_v2, %v694_v10  ;;  %v317_v23 = vmul.f32 %v680_v2, %v696_v11  ;;  %v325_v24 = vmul.f32 %v682_v3, %v690_v8  ;;  %v326_v25 = vmul.f32 %v682_v3, %v692_v9 }
  0xb3   :  { %v817_v10 = vmul.f32 %v436_v18, %v107_v7  ;;  %v239_v8 = vadd.f32 %v237_v28, %v228_v21  ;;  %v240_v9 = vadd.f32 %v238_v51, %v229_v22  ;;  %p483_p3 = por %p482_p2, %p481_p1 }
  0xb4   :  { %v327_v37 = vadd.f32 %v325_v24, %v316_v45  ;;  %v328_v46 = vadd.f32 %v326_v25, %v317_v23 }
  0xb5   :  { %v703_v14 = vpop.permute.xlu1 %245  ;;  %v705_v15 = vpop.permute.xlu0 %333  ;;  %p484_p4 = pnand %p483_p3, %p477_p0 }
  0xb6   :  { %v248_v29 = vmul.f32 %v703_v14, %v64_v34  ;;  %v249_v30 = vmul.f32 %v703_v14, %v65_v35  ;;  %v336_v2 = vmul.f32 %v705_v15, %v698_v12  ;;  %v337_v3 = vmul.f32 %v705_v15, %v700_v13 }
  0xb7   :  { %v165_v14 = vadd.f32 %v163_v20, %v154_v17 }
  0xb8   :  { %v250_v38 = vadd.f32 %v248_v29, %v239_v8  ;;  %v251_v39 = vadd.f32 %v249_v30, %v240_v9  ;;  %v338_v48 = vadd.f32 %v336_v2, %v327_v37  ;;  %v339_v13 = vadd.f32 %v337_v3, %v328_v46 }
  0xb9   :  { %v257_v26 = vpop.permute.xlu1 %256  ;;  %v723_v27 = vpop.permute.xlu0 %344 }
  0xba   :  { %v259_v11 = vmul.f32 %v257_v26, %v533_v0  ;;  %v260_v55 = vmul.f32 %v257_v26, %v540_v1  ;;  %v347_v47 = vmul.f32 %v723_v27, %v64_v34  ;;  %v348_v12 = vmul.f32 %v723_v27, %v65_v35 }
  0xbc   :  { %v261_v56 = vadd.f32 %v259_v11, %v250_v38  ;;  %v262_v26 = vadd.f32 %v260_v55, %v251_v39  ;;  %v349_v6 = vadd.f32 %v347_v47, %v338_v48  ;;  %v350_v54 = vadd.f32 %v348_v12, %v339_v13 }
  0xbd   :  { %v171_v60 = vpop.permute.xlu1 %170  ;;  %v268_v61 = vpop.permute.xlu0 %267 }
  0xbe   :  { %v173_v15 = vmul.f32 %v171_v60, %v763_v41  ;;  %v174_v50 = vmul.f32 %v171_v60, %v765_v57  ;;  %v270_v40 = vmul.f32 %v268_v61, %v763_v41  ;;  %v271_v58 = vmul.f32 %v268_v61, %v765_v57 }
  0xc0   :  { %v175_v49 = vadd.f32 %v173_v15, %v164_v36  ;;  %v176_v16 = vadd.f32 %v174_v50, %v165_v14  ;;  %v272_v18 = vadd.f32 %v270_v40, %v261_v56 }
  0xc1   :  { %v356_v53 = vpop.permute.xlu1 %355  ;;  %v182_v44 = vpop.permute.xlu0 %181 }
  0xc2   :  { %v358_v43 = vmul.f32 %v356_v53, %v533_v0  ;;  %v359_v34 = vmul.f32 %v356_v53, %v540_v1  ;;  %v184_v27 = vmul.f32 %v182_v44, %v771_v62  ;;  %v185_v35 = vmul.f32 %v182_v44, %v773_v63 }
  0xc3   :  { %v273_v0 = vadd.f32 %v271_v58, %v262_v26 }
  0xc4   :  { %v360_v21 = vadd.f32 %v358_v43, %v349_v6  ;;  %v361_v22 = vadd.f32 %v359_v34, %v350_v54  ;;  %v186_v53 = vadd.f32 %v184_v27, %v175_v49  ;;  %v187_v44 = vadd.f32 %v185_v35, %v176_v16 }
  0xc5   :  { %v279_v32 = vpop.permute.xlu1 %278  ;;  %v367_v33 = vpop.permute.xlu0 %366 }
  0xc6   :  { %v281_v60 = vmul.f32 %v279_v32, %v771_v62  ;;  %v282_v7 = vmul.f32 %v279_v32, %v773_v63  ;;  %v369_v61 = vmul.f32 %v367_v33, %v763_v41  ;;  %v370_v17 = vmul.f32 %v367_v33, %v765_v57 }
  0xc8   :  { %v283_v45 = vadd.f32 %v281_v60, %v272_v18  ;;  %v284_v23 = vadd.f32 %v282_v7, %v273_v0  ;;  %v371_v25 = vadd.f32 %v369_v61, %v360_v21  ;;  %v372_v57 = vadd.f32 %v370_v17, %v361_v22 }
  0xc9   :  { %v193_v59 = vpop.permute.xlu1 %192  ;;  %v290_v42 = vpop.permute.xlu0 %289 }
  0xca   :  { %v292_v1 = vmul.f32 %v290_v42, %v777_v4  ;;  %v293_v52 = vmul.f32 %v290_v42, %v779_v5  ;;  %v195_v24 = vmul.f32 %v193_v59, %v777_v4  ;;  %v196_v41 = vmul.f32 %v193_v59, %v779_v5 }
  0xcc   :  { %v294_v29 = vadd.f32 %v292_v1, %v283_v45  ;;  %v295_v30 = vadd.f32 %v293_v52, %v284_v23  ;;  %v197_v36 = vadd.f32 %v195_v24, %v186_v53 }
  0xcd   :  { %v378_v19 = vpop.permute.xlu1 %377  ;;  %v204_v20 = vpop.permute.xlu0 %203 }
  0xce   :  { %v380_v28 = vmul.f32 %v378_v19, %v771_v62  ;;  %v381_v51 = vmul.f32 %v378_v19, %v773_v63  ;;  %v206_v2 = vmul.f32 %v204_v20, %v817_v10  ;;  %v207_v3 = vmul.f32 %v204_v20, %v819_v31 }
  0xcf   :  { %v198_v62 = vadd.f32 %v196_v41, %v187_v44 }
  0xd0   :  { %v382_v14 = vadd.f32 %v380_v28, %v371_v25  ;;  %v383_v63 = vadd.f32 %v381_v51, %v372_v57  ;;  %v208_v38 = vadd.f32 %v206_v2, %v197_v36 }
  0xd1   :  { %v301_v8 = vpop.permute.xlu1 %300  ;;  %v389_v9 = vpop.permute.xlu0 %388  ;;  %v209_v39 = vadd.f32 %v207_v3, %v198_v62 }
  0xd2   :  { %v303_v11 = vmul.f32 %v301_v8, %v817_v10  ;;  %v304_v55 = vmul.f32 %v301_v8, %v819_v31  ;;  %v391_v32 = vmul.f32 %v389_v9, %v777_v4  ;;  %v392_v33 = vmul.f32 %v389_v9, %v779_v5 }
  0xd4   :  { %v305_v37 = vadd.f32 %v303_v11, %v294_v29  ;;  %v306_v46 = vadd.f32 %v304_v55, %v295_v30  ;;  %v393_v12 = vadd.f32 %v391_v32, %v382_v14  ;;  %v394_v48 = vadd.f32 %v392_v33, %v383_v63 }
  0xd5   :  { %v400_v47 = vpop.permute.xlu1 %399 }
  0xd6   :  { %v402_v13 = vmul.f32 %v400_v47, %v817_v10  ;;  %v403_v15 = vmul.f32 %v400_v47, %v819_v31  ;;  %v307_v4 = vmax.f32 %v208_v38, %v305_v37  ;;  %v308_v50 = vmax.f32 %v209_v39, %v306_v46 }
  0xd8   :  { %v404_v5 = vadd.f32 %v402_v13, %v393_v12  ;;  %v405_v56 = vadd.f32 %v403_v15, %v394_v48 }
  0xda   :  { %v406_v26 = vmax.f32 %v307_v4, %v404_v5  ;;  %v407_v40 = vmax.f32 %v308_v50, %v405_v56 }
  0xdc   :  { %408 = vst [vmem:[#allocation2] sm:$0xff] %v406_v26  ;;  %409 = vst [vmem:[#allocation2 + $0x8] sm:$0xff] %v407_v40 }
  0xdd   :  { %487 = shalt.err (!%p484_p4)
}
  0xde   :  { %s488_s27 = scalar_lea.hbm %s870_s3, 256 }
  0xdf   :  { %p489_p5 = scmp.ne.s32.totalorder %s870_s3, %s488_s27  ;;  %p492_p6 = scmp.lt.u32.totalorder %s488_s27, %s870_s3 }
  0xe1   :  { %p494_p7 = pnand %p492_p6, %p489_p5 }
  0xe3   :  { %497 = shalt.err (!%p494_p7)
}
  0xe4   :  { %419 = dma.vmem_to_hbm [thread:$0]  %s417_s23, 256, %s870_s3, [#allocation3]  }
  0xe5   :  { %498 = dma.done.wait [#allocation3], 256  }
  0xe6   :  { %499 = vsyncadd [#allocation3], 4294967040 }
  0xe7   :  { %423 = vsyncpa [#allocation3], 1 }

</bundles_post_ra>
